<compile_context>
chip_gen: v7x
topology: tpu7x:2x2x1
jax: 0.10.0
libtpu: 0.0.40
codegen_flags: <defaults>
</compile_context>

<pallas_src>
import functools

import jax
import jax.numpy as jnp
from jax import lax
from jax.experimental import pallas as pl
from jax.experimental.pallas import tpu as pltpu


def _block_kernel(x_ref, w1_ref, b1_ref, w2_ref, b2_ref, o_ref, *, B, H, W, Cout):
    """Fused 1x1 conv -> ReLU -> 3x3 conv (pad=1) -> ReLU, all images at once.

    Shapes (channel-major, spatial flattened into lanes):
      x_ref:  (B, Cin, HW)
      w1_ref: (Cmid, Cin)
      b1_ref: (Cmid, 1)
      w2_ref: (9*Cout, Cmid)   tap-stacked 3x3 weights, tap k = (dy+1)*3+(dx+1)
      b2_ref: (Cout, 1)
      o_ref:  (B, Cout, HW)    lane-dense output
    """
    HW = H * W
    N = B * HW

    # Stack all images along lanes: (Cin, B*HW).  Concat offsets are multiples
    # of HW (itself a multiple of 128) -> lane-aligned, no masked vector ops.
    if B > 1:
        x = jnp.concatenate([x_ref[b] for b in range(B)], axis=-1)
    else:
        x = x_ref[0]

    # ---- 1x1 conv + ReLU: (Cmid, Cin) @ (Cin, N) ----
    h = jnp.dot(w1_ref[...], x, preferred_element_type=jnp.float32)
    h = jnp.maximum(h + b1_ref[...], 0.0)                           # (Cmid, N)

    # ---- 3x3 conv: all 9 tap contributions in ONE matmul ----
    # z[k*Cout:(k+1)*Cout, p] = W2_k @ h[:, p] evaluated at the *source*
    # position p; the spatial shift of tap k is applied afterwards with a
    # cyclic lane roll (shift commutes with the channel contraction).
    z = jnp.dot(w2_ref[...], h, preferred_element_type=jnp.float32)  # (9*Cout, N)

    # Per-lane spatial coordinates; W and HW are powers of two here so the
    # mods lower to ANDs on the VPU.
    lane = lax.broadcasted_iota(jnp.int32, (1, N), 1)
    col = lane % W                      # x within the row
    q = lane % HW                       # flat position within the image
    not_left = col > 0                  # destination has a valid x-1 source
    not_right = col < (W - 1)           # destination has a valid x+1 source
    not_top = q >= W                    # destination has a valid y-1 source
    not_bot = q < (HW - W)              # destination has a valid y+1 source

    acc = None
    k = 0
    for dy in (-1, 0, 1):
        for dx in (-1, 0, 1):
            s = dy * W + dx                                 # source lane offset
            zk = z[k * Cout:(k + 1) * Cout, :]              # sublane-aligned slice
            # tap[p] = zk[p + s]  (cyclic; out-of-image wraps are masked below)
            tap = pltpu.roll(zk, (-s) % N, 1) if s != 0 else zk
            mask = None
            if dx == -1:
                mask = not_left
            elif dx == 1:
                mask = not_right
            if dy == -1:
                mask = not_top if mask is None else jnp.logical_and(mask, not_top)
            elif dy == 1:
                mask = not_bot if mask is None else jnp.logical_and(mask, not_bot)
            if mask is not None:
                tap = jnp.where(mask, tap, 0.0)
            acc = tap if acc is None else acc + tap
            k += 1

    out = jnp.maximum(acc + b2_ref[...], 0.0)               # (Cout, N), f32

    # Lane-dense unmasked stores at image-aligned offsets (multiples of HW).
    for b in range(B):
        o_ref[b] = out[:, b * HW:(b + 1) * HW].astype(o_ref.dtype)


def block_forward_pallas(x_nchw, w1_pt, b1, w2_pt, b2):
    """x_nchw: (B, Cin, H, W); w1_pt: (Cmid, Cin, 1, 1); b1: (Cmid,);
       w2_pt: (Cout, Cmid, 3, 3); b2: (Cout,).  Returns NCHW (B, Cout, H, W)."""
    B, Cin, H, W = x_nchw.shape
    Cmid = w1_pt.shape[0]
    Cout = w2_pt.shape[0]
    HW = H * W

    # Wrapper-side layout plumbing (free reshapes / tiny transposes for XLA).
    x_flat = x_nchw.reshape(B, Cin, HW)
    w1 = w1_pt.reshape(Cmid, Cin)
    # Tap-stacked weights: row (k*Cout + co) = w2_pt[co, :, ky, kx], k = ky*3 + kx.
    w2_stk = jnp.transpose(w2_pt, (2, 3, 0, 1)).reshape(9 * Cout, Cmid)
    b1v = b1.reshape(Cmid, 1)
    b2v = b2.reshape(Cout, 1)

    kernel = functools.partial(_block_kernel, B=B, H=H, W=W, Cout=Cout)

    out_flat = pl.pallas_call(
        kernel,
        out_shape=jax.ShapeDtypeStruct((B, Cout, HW), jnp.float32),
        grid_spec=pltpu.PrefetchScalarGridSpec(
            num_scalar_prefetch=0,
            grid=(1,),  # single fused step: batch is stacked into lanes
            in_specs=[
                pl.BlockSpec((B, Cin, HW), lambda i: (0, 0, 0)),
                pl.BlockSpec((Cmid, Cin), lambda i: (0, 0)),
                pl.BlockSpec((Cmid, 1), lambda i: (0, 0)),
                pl.BlockSpec((9 * Cout, Cmid), lambda i: (0, 0)),
                pl.BlockSpec((Cout, 1), lambda i: (0, 0)),
            ],
            out_specs=pl.BlockSpec((B, Cout, HW), lambda i: (0, 0, 0)),
        ),
        compiler_params=pltpu.CompilerParams(dimension_semantics=("arbitrary",)),
    )(x_flat, w1, b1v, w2_stk, b2v)

    return out_flat.reshape(B, Cout, H, W)


def block_forward_reference(x_nchw, w1_pt, b1, w2_pt, b2):
    """Plain-JAX reference matching PyTorch Block.forward semantics (NCHW)."""
    Cmid, Cin = w1_pt.shape[0], w1_pt.shape[1]
    h = jnp.einsum("oc,bchw->bohw", w1_pt.reshape(Cmid, Cin), x_nchw)
    h = jnp.maximum(h + b1.reshape(1, -1, 1, 1), 0.0)
    y = lax.conv_general_dilated(
        h, w2_pt, window_strides=(1, 1), padding=((1, 1), (1, 1)),
        dimension_numbers=("NCHW", "OIHW", "NCHW"))
    return jnp.maximum(y + b2.reshape(1, -1, 1, 1), 0.0)


if __name__ == "__main__":
    # Module hyper-params (len(time_steps) > 1 so the 1x1-conv branch is active).
    dim, dim_out = 4, 8
    time_steps = [0, 1]                 # T = 2
    T = len(time_steps)
    B, H, W = 2, 16, 16
    Cin = dim * T                       # 8

    key = jax.random.PRNGKey(0)
    k_x, k_w1, k_b1, k_w2, k_b2 = jax.random.split(key, 5)

    # PyTorch NCHW input and PyTorch-shaped Conv2d parameters.
    x = jax.random.normal(k_x, (B, Cin, H, W), dtype=jnp.float32)
    w1 = 0.1 * jax.random.normal(k_w1, (dim, Cin, 1, 1), dtype=jnp.float32)      # Conv2d(Cin, dim, 1)
    b1 = 0.1 * jax.random.normal(k_b1, (dim,), dtype=jnp.float32)
    w2 = 0.1 * jax.random.normal(k_w2, (dim_out, dim, 3, 3), dtype=jnp.float32)  # Conv2d(dim, dim_out, 3)
    b2 = 0.1 * jax.random.normal(k_b2, (dim_out,), dtype=jnp.float32)

    out = jax.block_until_ready(block_forward_pallas(x, w1, b1, w2, b2))
    ref = jax.block_until_ready(block_forward_reference(x, w1, b1, w2, b2))

    assert out.shape == (B, dim_out, H, W)
    max_err = float(jnp.max(jnp.abs(out - ref)))
    assert jnp.allclose(out, ref, atol=1e-4, rtol=1e-4), (
        "mismatch vs reference, max err = %e" % max_err)

    # TODO(synk): the len(time_steps) == 1 configuration (no 1x1 conv / ReLU
    # prelude) is not exercised here; it would be a strict subset of this kernel.
    print("KERNEL_OK")
</pallas_src>

<mosaic_0001>
module attributes {stable_mosaic.version = 11 : i64} {
  func.func @_block_kernel(%arg0: i32, %arg1: memref<2x8x256xf32, #tpu.memory_space<vmem>>, %arg2: memref<4x8xf32, #tpu.memory_space<vmem>>, %arg3: memref<4x1xf32, #tpu.memory_space<vmem>>, %arg4: memref<72x4xf32, #tpu.memory_space<vmem>>, %arg5: memref<8x1xf32, #tpu.memory_space<vmem>>, %arg6: memref<2x8x256xf32, #tpu.memory_space<vmem>>) attributes {dimension_semantics = [#tpu.dimension_semantics<arbitrary>], iteration_bounds = array<i64: 1>, scalar_prefetch = 0 : i64, scratch_operands = 0 : i64, tpu.core_type = #tpu.core_type<tc>, window_params = [{pipeline_mode = #tpu.pipeline_mode<synchronous>, transform_indices = @transform_0, window_bounds = array<i64: 2, 8, 256>}, {pipeline_mode = #tpu.pipeline_mode<synchronous>, transform_indices = @transform_1, window_bounds = array<i64: 4, 8>}, {pipeline_mode = #tpu.pipeline_mode<synchronous>, transform_indices = @transform_2, window_bounds = array<i64: 4, 1>}, {pipeline_mode = #tpu.pipeline_mode<synchronous>, transform_indices = @transform_3, window_bounds = array<i64: 72, 4>}, {pipeline_mode = #tpu.pipeline_mode<synchronous>, transform_indices = @transform_4, window_bounds = array<i64: 8, 1>}, {pipeline_mode = #tpu.pipeline_mode<synchronous>, transform_indices = @transform_5, window_bounds = array<i64: 2, 8, 256>}]} {
    %c0 = arith.constant 0 : index
    %c0_0 = arith.constant 0 : index
    %c0_1 = arith.constant 0 : index
    %0 = vector.load %arg1[%c0, %c0_0, %c0_1] : memref<2x8x256xf32, #tpu.memory_space<vmem>>, vector<1x8x256xf32>
    %1 = vector.shape_cast %0 : vector<1x8x256xf32> to vector<8x256xf32>
    %c1 = arith.constant 1 : index
    %c0_2 = arith.constant 0 : index
    %c0_3 = arith.constant 0 : index
    %2 = vector.load %arg1[%c1, %c0_2, %c0_3] : memref<2x8x256xf32, #tpu.memory_space<vmem>>, vector<1x8x256xf32>
    %3 = vector.shape_cast %2 : vector<1x8x256xf32> to vector<8x256xf32>
    %4 = tpu.concatenate %1, %3 in 1 : vector<8x256xf32>, vector<8x256xf32> -> vector<8x512xf32>
    %c0_4 = arith.constant 0 : index
    %c0_5 = arith.constant 0 : index
    %5 = vector.load %arg2[%c0_4, %c0_5] : memref<4x8xf32, #tpu.memory_space<vmem>>, vector<4x8xf32>
    %cst = arith.constant dense<0.000000e+00> : vector<4x512xf32>
    %6 = tpu.matmul %5, %4, %cst {dimension_numbers = #tpu.dot_dimension_numbers<[1], [0], [0], [1], [0, 0, 1, 1], [], []>} : vector<4x8xf32>, vector<8x512xf32>, vector<4x512xf32> -> vector<4x512xf32>
    %c0_6 = arith.constant 0 : index
    %c0_7 = arith.constant 0 : index
    %7 = vector.load %arg3[%c0_6, %c0_7] : memref<4x1xf32, #tpu.memory_space<vmem>>, vector<4x1xf32>
    %8 = vector.broadcast %7 : vector<4x1xf32> to vector<4x512xf32>
    %9 = arith.addf %6, %8 : vector<4x512xf32>
    %cst_8 = arith.constant 0.000000e+00 : f32
    %10 = vector.broadcast %cst_8 : f32 to vector<4x512xf32>
    %11 = arith.maximumf %9, %10 : vector<4x512xf32>
    %c0_9 = arith.constant 0 : index
    %c0_10 = arith.constant 0 : index
    %12 = vector.load %arg4[%c0_9, %c0_10] : memref<72x4xf32, #tpu.memory_space<vmem>>, vector<72x4xf32>
    %cst_11 = arith.constant dense<0.000000e+00> : vector<72x512xf32>
    %13 = tpu.matmul %12, %11, %cst_11 {dimension_numbers = #tpu.dot_dimension_numbers<[1], [0], [0], [1], [0, 0, 1, 1], [], []>} : vector<72x4xf32>, vector<4x512xf32>, vector<72x512xf32> -> vector<72x512xf32>
    %14 = tpu.iota {dimensions = array<i32: 1>} : vector<1x512xi32>
    %c16_i32 = arith.constant 16 : i32
    %c0_i32 = arith.constant 0 : i32
    %15 = arith.cmpi eq, %c16_i32, %c0_i32 : i32
    %c1_i32 = arith.constant 1 : i32
    %16 = arith.select %15, %c1_i32, %c16_i32 : i32
    %17 = vector.broadcast %16 : i32 to vector<1x512xi32>
    %18 = arith.remsi %14, %17 : vector<1x512xi32>
    %c0_i32_12 = arith.constant 0 : i32
    %19 = vector.broadcast %c0_i32_12 : i32 to vector<1x512xi32>
    %20 = arith.cmpi ne, %18, %19 : vector<1x512xi32>
    %c0_i32_13 = arith.constant 0 : i32
    %21 = vector.broadcast %c0_i32_13 : i32 to vector<1x512xi32>
    %22 = arith.cmpi slt, %18, %21 : vector<1x512xi32>
    %c0_i32_14 = arith.constant 0 : i32
    %23 = arith.cmpi slt, %16, %c0_i32_14 : i32
    %24 = vector.broadcast %23 : i1 to vector<1x512xi1>
    %25 = vector.broadcast %24 : vector<1x512xi1> to vector<1x512xi1>
    %26 = arith.xori %22, %25 : vector<1x512xi1>
    %27 = arith.andi %26, %20 : vector<1x512xi1>
    %28 = vector.broadcast %16 : i32 to vector<1x512xi32>
    %29 = arith.addi %18, %28 : vector<1x512xi32>
    %30 = arith.select %27, %29, %18 : vector<1x512xi1>, vector<1x512xi32>
    %c256_i32 = arith.constant 256 : i32
    %c0_i32_15 = arith.constant 0 : i32
    %31 = arith.cmpi eq, %c256_i32, %c0_i32_15 : i32
    %c1_i32_16 = arith.constant 1 : i32
    %32 = arith.select %31, %c1_i32_16, %c256_i32 : i32
    %33 = vector.broadcast %32 : i32 to vector<1x512xi32>
    %34 = arith.remsi %14, %33 : vector<1x512xi32>
    %c0_i32_17 = arith.constant 0 : i32
    %35 = vector.broadcast %c0_i32_17 : i32 to vector<1x512xi32>
    %36 = arith.cmpi ne, %34, %35 : vector<1x512xi32>
    %c0_i32_18 = arith.constant 0 : i32
    %37 = vector.broadcast %c0_i32_18 : i32 to vector<1x512xi32>
    %38 = arith.cmpi slt, %34, %37 : vector<1x512xi32>
    %c0_i32_19 = arith.constant 0 : i32
    %39 = arith.cmpi slt, %32, %c0_i32_19 : i32
    %40 = vector.broadcast %39 : i1 to vector<1x512xi1>
    %41 = vector.broadcast %40 : vector<1x512xi1> to vector<1x512xi1>
    %42 = arith.xori %38, %41 : vector<1x512xi1>
    %43 = arith.andi %42, %36 : vector<1x512xi1>
    %44 = vector.broadcast %32 : i32 to vector<1x512xi32>
    %45 = arith.addi %34, %44 : vector<1x512xi32>
    %46 = arith.select %43, %45, %34 : vector<1x512xi1>, vector<1x512xi32>
    %c0_i32_20 = arith.constant 0 : i32
    %47 = vector.broadcast %c0_i32_20 : i32 to vector<1x512xi32>
    %48 = arith.cmpi sgt, %30, %47 : vector<1x512xi32>
    %c15_i32 = arith.constant 15 : i32
    %49 = vector.broadcast %c15_i32 : i32 to vector<1x512xi32>
    %50 = arith.cmpi slt, %30, %49 : vector<1x512xi32>
    %c16_i32_21 = arith.constant 16 : i32
    %51 = vector.broadcast %c16_i32_21 : i32 to vector<1x512xi32>
    %52 = arith.cmpi sge, %46, %51 : vector<1x512xi32>
    %c240_i32 = arith.constant 240 : i32
    %53 = vector.broadcast %c240_i32 : i32 to vector<1x512xi32>
    %54 = arith.cmpi slt, %46, %53 : vector<1x512xi32>
    %55 = vector.extract_strided_slice %13 {offsets = [0, 0], sizes = [8, 512], strides = [1, 1]} : vector<72x512xf32> to vector<8x512xf32>
    %c17_i32 = arith.constant 17 : i32
    %56 = tpu.dynamic_rotate %55 by %c17_i32 dim 1 : vector<8x512xf32>, i32 -> vector<8x512xf32>
    %57 = arith.andi %48, %52 : vector<1x512xi1>
    %cst_22 = arith.constant 0.000000e+00 : f32
    %58 = vector.shape_cast %57 : vector<1x512xi1> to vector<1x512xi1>
    %59 = vector.broadcast %58 : vector<1x512xi1> to vector<8x512xi1>
    %60 = vector.broadcast %cst_22 : f32 to vector<8x512xf32>
    %61 = arith.select %59, %56, %60 : vector<8x512xi1>, vector<8x512xf32>
    %62 = vector.extract_strided_slice %13 {offsets = [8, 0], sizes = [8, 512], strides = [1, 1]} : vector<72x512xf32> to vector<8x512xf32>
    %c16_i32_23 = arith.constant 16 : i32
    %63 = tpu.dynamic_rotate %62 by %c16_i32_23 dim 1 : vector<8x512xf32>, i32 -> vector<8x512xf32>
    %cst_24 = arith.constant 0.000000e+00 : f32
    %64 = vector.shape_cast %52 : vector<1x512xi1> to vector<1x512xi1>
    %65 = vector.broadcast %64 : vector<1x512xi1> to vector<8x512xi1>
    %66 = vector.broadcast %cst_24 : f32 to vector<8x512xf32>
    %67 = arith.select %65, %63, %66 : vector<8x512xi1>, vector<8x512xf32>
    %68 = arith.addf %61, %67 : vector<8x512xf32>
    %69 = vector.extract_strided_slice %13 {offsets = [16, 0], sizes = [8, 512], strides = [1, 1]} : vector<72x512xf32> to vector<8x512xf32>
    %c15_i32_25 = arith.constant 15 : i32
    %70 = tpu.dynamic_rotate %69 by %c15_i32_25 dim 1 : vector<8x512xf32>, i32 -> vector<8x512xf32>
    %71 = arith.andi %50, %52 : vector<1x512xi1>
    %cst_26 = arith.constant 0.000000e+00 : f32
    %72 = vector.shape_cast %71 : vector<1x512xi1> to vector<1x512xi1>
    %73 = vector.broadcast %72 : vector<1x512xi1> to vector<8x512xi1>
    %74 = vector.broadcast %cst_26 : f32 to vector<8x512xf32>
    %75 = arith.select %73, %70, %74 : vector<8x512xi1>, vector<8x512xf32>
    %76 = arith.addf %68, %75 : vector<8x512xf32>
    %77 = vector.extract_strided_slice %13 {offsets = [24, 0], sizes = [8, 512], strides = [1, 1]} : vector<72x512xf32> to vector<8x512xf32>
    %c1_i32_27 = arith.constant 1 : i32
    %78 = tpu.dynamic_rotate %77 by %c1_i32_27 dim 1 : vector<8x512xf32>, i32 -> vector<8x512xf32>
    %cst_28 = arith.constant 0.000000e+00 : f32
    %79 = vector.shape_cast %48 : vector<1x512xi1> to vector<1x512xi1>
    %80 = vector.broadcast %79 : vector<1x512xi1> to vector<8x512xi1>
    %81 = vector.broadcast %cst_28 : f32 to vector<8x512xf32>
    %82 = arith.select %80, %78, %81 : vector<8x512xi1>, vector<8x512xf32>
    %83 = arith.addf %76, %82 : vector<8x512xf32>
    %84 = vector.extract_strided_slice %13 {offsets = [32, 0], sizes = [8, 512], strides = [1, 1]} : vector<72x512xf32> to vector<8x512xf32>
    %85 = arith.addf %83, %84 : vector<8x512xf32>
    %86 = vector.extract_strided_slice %13 {offsets = [40, 0], sizes = [8, 512], strides = [1, 1]} : vector<72x512xf32> to vector<8x512xf32>
    %c511_i32 = arith.constant 511 : i32
    %87 = tpu.dynamic_rotate %86 by %c511_i32 dim 1 : vector<8x512xf32>, i32 -> vector<8x512xf32>
    %cst_29 = arith.constant 0.000000e+00 : f32
    %88 = vector.shape_cast %50 : vector<1x512xi1> to vector<1x512xi1>
    %89 = vector.broadcast %88 : vector<1x512xi1> to vector<8x512xi1>
    %90 = vector.broadcast %cst_29 : f32 to vector<8x512xf32>
    %91 = arith.select %89, %87, %90 : vector<8x512xi1>, vector<8x512xf32>
    %92 = arith.addf %85, %91 : vector<8x512xf32>
    %93 = vector.extract_strided_slice %13 {offsets = [48, 0], sizes = [8, 512], strides = [1, 1]} : vector<72x512xf32> to vector<8x512xf32>
    %c497_i32 = arith.constant 497 : i32
    %94 = tpu.dynamic_rotate %93 by %c497_i32 dim 1 : vector<8x512xf32>, i32 -> vector<8x512xf32>
    %95 = arith.andi %48, %54 : vector<1x512xi1>
    %cst_30 = arith.constant 0.000000e+00 : f32
    %96 = vector.shape_cast %95 : vector<1x512xi1> to vector<1x512xi1>
    %97 = vector.broadcast %96 : vector<1x512xi1> to vector<8x512xi1>
    %98 = vector.broadcast %cst_30 : f32 to vector<8x512xf32>
    %99 = arith.select %97, %94, %98 : vector<8x512xi1>, vector<8x512xf32>
    %100 = arith.addf %92, %99 : vector<8x512xf32>
    %101 = vector.extract_strided_slice %13 {offsets = [56, 0], sizes = [8, 512], strides = [1, 1]} : vector<72x512xf32> to vector<8x512xf32>
    %c496_i32 = arith.constant 496 : i32
    %102 = tpu.dynamic_rotate %101 by %c496_i32 dim 1 : vector<8x512xf32>, i32 -> vector<8x512xf32>
    %cst_31 = arith.constant 0.000000e+00 : f32
    %103 = vector.shape_cast %54 : vector<1x512xi1> to vector<1x512xi1>
    %104 = vector.broadcast %103 : vector<1x512xi1> to vector<8x512xi1>
    %105 = vector.broadcast %cst_31 : f32 to vector<8x512xf32>
    %106 = arith.select %104, %102, %105 : vector<8x512xi1>, vector<8x512xf32>
    %107 = arith.addf %100, %106 : vector<8x512xf32>
    %108 = vector.extract_strided_slice %13 {offsets = [64, 0], sizes = [8, 512], strides = [1, 1]} : vector<72x512xf32> to vector<8x512xf32>
    %c495_i32 = arith.constant 495 : i32
    %109 = tpu.dynamic_rotate %108 by %c495_i32 dim 1 : vector<8x512xf32>, i32 -> vector<8x512xf32>
    %110 = arith.andi %50, %54 : vector<1x512xi1>
    %cst_32 = arith.constant 0.000000e+00 : f32
    %111 = vector.shape_cast %110 : vector<1x512xi1> to vector<1x512xi1>
    %112 = vector.broadcast %111 : vector<1x512xi1> to vector<8x512xi1>
    %113 = vector.broadcast %cst_32 : f32 to vector<8x512xf32>
    %114 = arith.select %112, %109, %113 : vector<8x512xi1>, vector<8x512xf32>
    %115 = arith.addf %107, %114 : vector<8x512xf32>
    %c0_33 = arith.constant 0 : index
    %c0_34 = arith.constant 0 : index
    %116 = vector.load %arg5[%c0_33, %c0_34] : memref<8x1xf32, #tpu.memory_space<vmem>>, vector<8x1xf32>
    %117 = vector.broadcast %116 : vector<8x1xf32> to vector<8x512xf32>
    %118 = arith.addf %115, %117 : vector<8x512xf32>
    %cst_35 = arith.constant 0.000000e+00 : f32
    %119 = vector.broadcast %cst_35 : f32 to vector<8x512xf32>
    %120 = arith.maximumf %118, %119 : vector<8x512xf32>
    %121 = vector.extract_strided_slice %120 {offsets = [0, 0], sizes = [8, 256], strides = [1, 1]} : vector<8x512xf32> to vector<8x256xf32>
    %c0_36 = arith.constant 0 : index
    %c0_37 = arith.constant 0 : index
    %c0_38 = arith.constant 0 : index
    %122 = vector.load %arg6[%c0_36, %c0_37, %c0_38] : memref<2x8x256xf32, #tpu.memory_space<vmem>>, vector<1x8x256xf32>
    %123 = vector.shape_cast %122 : vector<1x8x256xf32> to vector<8x256xf32>
    %124 = vector.shape_cast %121 : vector<8x256xf32> to vector<1x8x256xf32>
    tpu.vector_store %arg6[%c0_36, %c0_37, %c0_38], %124 {strides = array<i32>} : memref<2x8x256xf32, #tpu.memory_space<vmem>>, vector<1x8x256xf32>,
    %125 = vector.extract_strided_slice %120 {offsets = [0, 256], sizes = [8, 256], strides = [1, 1]} : vector<8x512xf32> to vector<8x256xf32>
    %c1_39 = arith.constant 1 : index
    %c0_40 = arith.constant 0 : index
    %c0_41 = arith.constant 0 : index
    %126 = vector.load %arg6[%c1_39, %c0_40, %c0_41] : memref<2x8x256xf32, #tpu.memory_space<vmem>>, vector<1x8x256xf32>
    %127 = vector.shape_cast %126 : vector<1x8x256xf32> to vector<8x256xf32>
    %128 = vector.shape_cast %125 : vector<8x256xf32> to vector<1x8x256xf32>
    tpu.vector_store %arg6[%c1_39, %c0_40, %c0_41], %128 {strides = array<i32>} : memref<2x8x256xf32, #tpu.memory_space<vmem>>, vector<1x8x256xf32>,
    return
  }
  func.func @transform_0(%arg0: i32) -> (i32, i32, i32) {
    %c0_i32 = arith.constant 0 : i32
    %c0_i32_0 = arith.constant 0 : i32
    %c0_i32_1 = arith.constant 0 : i32
    %c0_i32_2 = arith.constant 0 : i32
    return %c0_i32, %c0_i32_0, %c0_i32_1 : i32, i32, i32
  }
  func.func @transform_1(%arg0: i32) -> (i32, i32) {
    %c0_i32 = arith.constant 0 : i32
    %c0_i32_0 = arith.constant 0 : i32
    %c0_i32_1 = arith.constant 0 : i32
    return %c0_i32, %c0_i32_0 : i32, i32
  }
  func.func @transform_2(%arg0: i32) -> (i32, i32) {
    %c0_i32 = arith.constant 0 : i32
    %c0_i32_0 = arith.constant 0 : i32
    %c0_i32_1 = arith.constant 0 : i32
    return %c0_i32, %c0_i32_0 : i32, i32
  }
  func.func @transform_3(%arg0: i32) -> (i32, i32) {
    %c0_i32 = arith.constant 0 : i32
    %c0_i32_0 = arith.constant 0 : i32
    %c0_i32_1 = arith.constant 0 : i32
    return %c0_i32, %c0_i32_0 : i32, i32
  }
  func.func @transform_4(%arg0: i32) -> (i32, i32) {
    %c0_i32 = arith.constant 0 : i32
    %c0_i32_0 = arith.constant 0 : i32
    %c0_i32_1 = arith.constant 0 : i32
    return %c0_i32, %c0_i32_0 : i32, i32
  }
  func.func @transform_5(%arg0: i32) -> (i32, i32, i32) {
    %c0_i32 = arith.constant 0 : i32
    %c0_i32_0 = arith.constant 0 : i32
    %c0_i32_1 = arith.constant 0 : i32
    %c0_i32_2 = arith.constant 0 : i32
    return %c0_i32, %c0_i32_0, %c0_i32_1 : i32, i32, i32
  }
}

</mosaic_0001>

<bundles_post_ra>
// kernel: tpu_custom_call.1
= control target key start
LH: loop header
LB: loop body
LE: loop exit
PB: predicated region body
PF: predicated region fallthrough
CT: control target
= control target key end

     0   :  { %vm33_vm0 = vcmask 64512   ;;  %v935_v5 = vmov 0.0   ;;  %s1356_s0 = inlined_call_operand.vmem [shape: f32[2,8,256], index: 0, kind: input, shape index: {}]   ;;  %s1357_s1 = inlined_call_operand.vmem [shape: f32[4,8], index: 1, kind: input, shape index: {}]   ;;  %s1358_s2 = inlined_call_operand.vmem [shape: f32[4,1], index: 2, kind: input, shape index: {}]   ;;  %s1359_s3 = inlined_call_operand.vmem [shape: f32[72,4], index: 3, kind: input, shape index: {}]   ;;  %s1360_s4 = inlined_call_operand.vmem [shape: f32[8,1], index: 4, kind: input, shape index: {}]   ;;  %s1361_s5 = inlined_call_operand.hbm [shape: f32[2,8,256], index: 5, kind: output, shape index: {}]  }
   0x1   :  { %v22_v0 = vld [vmem:[%s1356_s0 + $0x8] sm:$0xff]  ;;  %v872_v1 = vld [vmem:[%s1356_s0 + $0x18] sm:$0xff]  ;;  %v21_v2 = vld [vmem:[%s1356_s0] sm:$0xff]  ;;  %101 = vmatprep.mubr.f32.mxu0 %v935_v5 }
   0x2   :  { %37 = vmatprep.subr.mxu0 %v22_v0  ;;  %108 = vmatprep.subr.mxu1 %v872_v1  ;;  %v871_v3 = vld [vmem:[%s1356_s0 + $0x10] sm:$0xff]  ;;  %v26_v4 = vld [vmem:[%s1357_s1] sm:$0xf] }
   0x3   :  { %38 = vmatpush1.msra.mxu0 %v21_v2 }
   0x4   :  { %10 = vsyncpa [#allocation3], 0  ;;  %109 = vmatpush1.msra.mxu1 %v871_v3  ;;  %172 = vmatprep.mubr.f32.mxu1 %v935_v5  ;;  %v27_v6 = vld [vmem:[%s1358_s2] sm:$0xf]  ;;  %v936_v7 = vmov 0   ;;  %vm220_vm1 = vcmask 1043456  }
   0x5   :  { %873 = vmatmul.mubr.msk.f32.vlgmr.msra.gmra.mrb[0].mxu0 %vm33_vm0, %v26_v4  ;;  %874 = vmatmul.mubr.msk.f32.vlgmr.msra.gmra.mrb[0].mxu1 %vm33_vm0, %v26_v4  ;;  %v836_v8 = vld [vmem:[%s1360_s4] sm:$0xff]  ;;  %vm192_vm2 = vcmask 31744   ;;  %v184_v23 = vld [vmem:[%s1359_s3 + $0x8] sm:$0xff]  ;;  %v185_v24 = vld [vmem:[%s1359_s3 + $0x10] sm:$0xff]  ;;  %s937_s21 = smov 17   ;;  %s939_s22 = smov 15  }
   0x6   :  { %909 = vset.pattern.permute.xlu0 %v936_v7  ;;  %297 = vmatprep.mubr.f32.mxu0 %v935_v5  ;;  %v183_v22 = vld [vmem:[%s1359_s3] sm:$0xff]  ;;  %v186_v25 = vld [vmem:[%s1359_s3 + $0x18] sm:$0xff]  ;;  %v188_v27 = vld [vmem:[%s1359_s3 + $0x28] sm:$0xff]  ;;  %s940_s23 = smov 1   ;;  %s941_s24 = smov 127  }
   0x7   :  { %30 = vperm.xlu0 %909, %v27_v6   ;;  %416 = vmatprep.mubr.f32.mxu1 %v935_v5  ;;  %v187_v26 = vld [vmem:[%s1359_s3 + $0x20] sm:$0xff]  ;;  %v189_v28 = vld [vmem:[%s1359_s3 + $0x30] sm:$0xff]  ;;  %v190_v29 = vld [vmem:[%s1359_s3 + $0x38] sm:$0xff]  ;;  %s942_s25 = smov 113   ;;  %s943_s26 = smov 112  }
   0x8   :  { %910 = vset.pattern.permute.xlu1 %v936_v7  ;;  %v191_v30 = vld [vmem:[%s1359_s3 + $0x40] sm:$0xff]  ;;  %s938_s3 = smov 16   ;;  %s944_s27 = smov 111  }
   0x9   :  { %839 = vperm.xlu1 %910, %v836_v8   ;;  %s945_s28 = smov [#allocation2]  }
   0xa   :  { %s860_s29 = sshll.u32 %s945_s28, 4  ;;  %s861_s29 = int_to_ptr.vmem [resolvable:$true] %s860_s29 }
   0xb   :  { %s911_s0 = scalar_lea.vmem %s861_s29, 512  ;;  %p916_p1 = scmp.lt.s32.totalorder %s861_s29, %s861_s29 }
   0xc   :  { %p912_p0 = scmp.ne.s32.totalorder %s861_s29, %s911_s0  ;;  %p917_p2 = scmp.lt.s32.totalorder %s911_s0, %s911_s0 }
   0xe   :  { %p918_p3 = por %p917_p2, %p916_p1 }
  0x10   :  { %p919_p4 = pnand %p918_p3, %p912_p0 }
  0x86   :  { %v31_v9 = vpop.permute.xlu0 %30 }
  0x88   :  { %v1075_v3 = vpop.permute.xlu1 %839 }
  0xd8   :  { %v103_v10 = vpop.f32.mrb[0].mxu0  ;;  %v174_v11 = vpop.f32.mrb[0].mxu1 }
  0xd9   :  { %v104_v12 = vadd.f32 %v103_v10, %v31_v9  ;;  %v175_v13 = vadd.f32 %v174_v11, %v31_v9  ;;  %v105_v14 = vpop.f32.mrb[1].mxu0  ;;  %v176_v15 = vpop.f32.mrb[1].mxu1 }
  0xda   :  { %v106_v16 = vadd.f32 %v105_v14, %v31_v9  ;;  %v177_v17 = vadd.f32 %v176_v15, %v31_v9  ;;  %v471_v14 = vlaneseq }
  0xdb   :  { %v179_v20 = vmax.f32 %v104_v12, 0.0  ;;  %v181_v21 = vmax.f32 %v175_v13, 0.0 }
  0xdc   :  { %v180_v18 = vmax.f32 %v106_v16, 0.0  ;;  %v182_v19 = vmax.f32 %v177_v17, 0.0  ;;  %v1087_v17 = vand.u32 127, %v471_v14 }
  0xde   :  { %875 = vmatprep.subr.msk.mxu0 %vm220_vm1, %v180_v18  ;;  %886 = vmatprep.subr.msk.mxu1 %vm220_vm1, %v182_v19  ;;  %vm596_vm5 = vcmp.lt.s32.totalorder %v1087_v17, 17  ;;  %vm625_vm6 = vcmp.lt.s32.totalorder %v1087_v17, 16  ;;  %vm654_vm14 = vcmp.lt.s32.totalorder %v1087_v17, 15 }
  0xdf   :  { %876 = vmatpush1.msk.msra.mxu0 %vm220_vm1, %v179_v20  ;;  %887 = vmatpush1.msk.msra.mxu1 %vm220_vm1, %v181_v21  ;;  %v1090_v20 = vadd.s32 384, %v1087_v17  ;;  %v1093_v21 = vadd.s32 128, %v1087_v17 }
  0xe0   :  { %877 = vmatmul.mubr.msk.f32.vlgmr.msra.gmra.mrb[2].mxu0 %vm192_vm2, %v183_v22  ;;  %888 = vmatmul.mubr.msk.f32.vlgmr.msra.gmra.mrb[2].mxu1 %vm192_vm2, %v183_v22  ;;  %v474_v22 = vadd.s32 256, %v1087_v17 }
  0xe1   :  { %303 = vmatprep.mubr.f32.mxu0 %v935_v5  ;;  %422 = vmatprep.mubr.f32.mxu1 %v935_v5 }
  0xe4   :  { %878 = vmatmul.mubr.msk.f32.gmra.mrb[4].mxu0 %vm192_vm2, %v184_v23  ;;  %889 = vmatmul.mubr.msk.f32.gmra.mrb[4].mxu1 %vm192_vm2, %v184_v23  ;;  %v480_v23 = vand.u32 15, %v1087_v17 }
  0xe5   :  { %309 = vmatprep.mubr.f32.mxu0 %v935_v5  ;;  %428 = vmatprep.mubr.f32.mxu1 %v935_v5 }
  0xe6   :  { %vm1104_vm3 = vcmp.gt.s32.totalorder %v480_v23, 0  ;;  %vm1118_vm7 = vcmp.lt.s32.totalorder %v480_v23, 15 }
  0xe8   :  { %879 = vmatmul.mubr.msk.f32.gmra.mrb[6].mxu0 %vm192_vm2, %v185_v24  ;;  %890 = vmatmul.mubr.msk.f32.gmra.mrb[6].mxu1 %vm192_vm2, %v185_v24  ;;  %v528_v24 = vand.u32 255, %v1087_v17 }
  0xe9   :  { %315 = vmatprep.mubr.f32.mxu0 %v935_v5  ;;  %434 = vmatprep.mubr.f32.mxu1 %v935_v5 }
  0xea   :  { %vm1108_vm4 = vcmp.ge.s32.totalorder %v528_v24, 16 }
  0xeb   :  { %vm1383_vm1 = vmand %vm1104_vm3, %vm1108_vm4 }
  0xec   :  { %880 = vmatmul.mubr.msk.f32.gmra.mrb[8].mxu0 %vm192_vm2, %v186_v25  ;;  %891 = vmatmul.mubr.msk.f32.gmra.mrb[8].mxu1 %vm192_vm2, %v186_v25 }
  0xed   :  { %321 = vmatprep.mubr.f32.mxu0 %v935_v5  ;;  %440 = vmatprep.mubr.f32.mxu1 %v935_v5 }
  0xf0   :  { %881 = vmatmul.mubr.msk.f32.gmra.mrb[10].mxu0 %vm192_vm2, %v187_v26  ;;  %892 = vmatmul.mubr.msk.f32.gmra.mrb[10].mxu1 %vm192_vm2, %v187_v26 }
  0xf1   :  { %327 = vmatprep.mubr.f32.mxu0 %v935_v5  ;;  %446 = vmatprep.mubr.f32.mxu1 %v935_v5 }
  0xf4   :  { %882 = vmatmul.mubr.msk.f32.gmra.mrb[12].mxu0 %vm192_vm2, %v188_v27  ;;  %893 = vmatmul.mubr.msk.f32.gmra.mrb[12].mxu1 %vm192_vm2, %v188_v27  ;;  %v501_v27 = vand.u32 15, %v1090_v20 }
  0xf5   :  { %333 = vmatprep.mubr.f32.mxu0 %v935_v5  ;;  %452 = vmatprep.mubr.f32.mxu1 %v935_v5 }
  0xf6   :  { %vm1122_vm8 = vcmp.gt.s32.totalorder %v501_v27, 0  ;;  %vm1155_vm0 = vcmp.lt.s32.totalorder %v501_v27, 15 }
  0xf8   :  { %883 = vmatmul.mubr.msk.f32.gmra.mrb[14].mxu0 %vm192_vm2, %v189_v28  ;;  %894 = vmatmul.mubr.msk.f32.gmra.mrb[14].mxu1 %vm192_vm2, %v189_v28  ;;  %v487_v28 = vand.u32 15, %v1093_v21 }
  0xf9   :  { %339 = vmatprep.mubr.f32.mxu0 %v935_v5  ;;  %458 = vmatprep.mubr.f32.mxu1 %v935_v5 }
  0xfa   :  { %vm1126_vm9 = vcmp.gt.s32.totalorder %v487_v28, 0  ;;  %vm1146_vm13 = vcmp.lt.s32.totalorder %v487_v28, 15 }
  0xfc   :  { %884 = vmatmul.mubr.msk.f32.gmra.mrb[16].mxu0 %vm192_vm2, %v190_v29  ;;  %895 = vmatmul.mubr.msk.f32.gmra.mrb[16].mxu1 %vm192_vm2, %v190_v29  ;;  %v494_v29 = vand.u32 15, %v474_v22 }
  0xfd   :  { %345 = vmatprep.mubr.f32.mxu0 %v935_v5  ;;  %464 = vmatprep.mubr.f32.mxu1 %v935_v5 }
  0xfe   :  { %vm1130_vm10 = vcmp.gt.s32.totalorder %v494_v29, 0  ;;  %vm1151_vm15 = vcmp.lt.s32.totalorder %v494_v29, 15 }
 0x100   :  { %885 = vmatmul.mubr.msk.f32.gmra.mrb[18].mxu0 %vm192_vm2, %v191_v30  ;;  %896 = vmatmul.mubr.msk.f32.gmra.mrb[18].mxu1 %vm192_vm2, %v191_v30  ;;  %v542_v30 = vand.u32 255, %v474_v22  ;;  %vm1362_vm2 = vcmp.lt.s32.totalorder %v1087_v17, 1 }
 0x102   :  { %vm1134_vm11 = vcmp.ge.s32.totalorder %v542_v30, 16 }
 0x103   :  { %vm603_vm12 = vmand %vm1130_vm10, %vm1134_vm11 }
 0x1b3   :  { %v299_v31 = vpop.f32.mrb[2].mxu0  ;;  %v418_v32 = vpop.f32.mrb[2].mxu1 }
 0x1b4   :  { %592 = vrot.lane.b32.xlu1 %v418_v32, %s937_s21  ;;  %588 = vrot.lane.b32.xlu0 %v299_v31, %s937_s21  ;;  %v301_v33 = vpop.f32.mrb[3].mxu0  ;;  %v420_v34 = vpop.f32.mrb[3].mxu1 }
 0x1b7   :  { %v305_v35 = vpop.f32.mrb[4].mxu0  ;;  %v424_v36 = vpop.f32.mrb[4].mxu1 }
 0x1b8   :  { %594 = vrot.lane.b32.xlu0 %v420_v34, %s937_s21  ;;  %590 = vrot.lane.b32.xlu1 %v301_v33, %s937_s21  ;;  %v307_v37 = vpop.f32.mrb[5].mxu0  ;;  %v426_v38 = vpop.f32.mrb[5].mxu1 }
 0x1bb   :  { %v311_v39 = vpop.f32.mrb[6].mxu0  ;;  %v430_v40 = vpop.f32.mrb[6].mxu1 }
 0x1bc   :  { %617 = vrot.lane.b32.xlu1 %v305_v35, %s938_s3  ;;  %619 = vrot.lane.b32.xlu0 %v307_v37, %s938_s3  ;;  %v313_v41 = vpop.f32.mrb[7].mxu0  ;;  %v432_v42 = vpop.f32.mrb[7].mxu1 }
 0x1bf   :  { %v317_v43 = vpop.f32.mrb[8].mxu0  ;;  %v436_v44 = vpop.f32.mrb[8].mxu1 }
 0x1c0   :  { %621 = vrot.lane.b32.xlu1 %v424_v36, %s938_s3  ;;  %623 = vrot.lane.b32.xlu0 %v426_v38, %s938_s3  ;;  %v319_v45 = vpop.f32.mrb[9].mxu0  ;;  %v438_v46 = vpop.f32.mrb[9].mxu1 }
 0x1c3   :  { %v1067_v47 = vpop.f32.mrb[10].mxu0  ;;  %v1069_v48 = vpop.f32.mrb[10].mxu1 }
 0x1c4   :  { %646 = vrot.lane.b32.xlu1 %v311_v39, %s939_s22  ;;  %648 = vrot.lane.b32.xlu0 %v313_v41, %s939_s22  ;;  %v1071_v49 = vpop.f32.mrb[11].mxu0  ;;  %v1073_v50 = vpop.f32.mrb[11].mxu1 }
 0x1c7   :  { %v329_v51 = vpop.f32.mrb[12].mxu0  ;;  %v448_v52 = vpop.f32.mrb[12].mxu1 }
 0x1c8   :  { %650 = vrot.lane.b32.xlu1 %v430_v40, %s939_s22  ;;  %652 = vrot.lane.b32.xlu0 %v432_v42, %s939_s22  ;;  %v331_v53 = vpop.f32.mrb[13].mxu0  ;;  %v450_v54 = vpop.f32.mrb[13].mxu1 }
 0x1cb   :  { %v335_v55 = vpop.f32.mrb[14].mxu0  ;;  %v454_v56 = vpop.f32.mrb[14].mxu1 }
 0x1cc   :  { %679 = vrot.lane.b32.xlu1 %v317_v43, %s940_s23  ;;  %681 = vrot.lane.b32.xlu0 %v319_v45, %s940_s23  ;;  %v337_v57 = vpop.f32.mrb[15].mxu0  ;;  %v456_v58 = vpop.f32.mrb[15].mxu1 }
 0x1cf   :  { %v341_v59 = vpop.f32.mrb[16].mxu0  ;;  %v460_v60 = vpop.f32.mrb[16].mxu1 }
 0x1d0   :  { %683 = vrot.lane.b32.xlu1 %v436_v44, %s940_s23  ;;  %685 = vrot.lane.b32.xlu0 %v438_v46, %s940_s23  ;;  %v343_v61 = vpop.f32.mrb[17].mxu0  ;;  %v462_v62 = vpop.f32.mrb[17].mxu1 }
 0x1d3   :  { %v347_v63 = vpop.f32.mrb[18].mxu0  ;;  %v466_v0 = vpop.f32.mrb[18].mxu1 }
 0x1d4   :  { %712 = vrot.lane.b32.xlu1 %v329_v51, %s941_s24  ;;  %714 = vrot.lane.b32.xlu0 %v331_v53, %s941_s24  ;;  %v349_v1 = vpop.f32.mrb[19].mxu0  ;;  %v468_v2 = vpop.f32.mrb[19].mxu1 }
 0x1d8   :  { %716 = vrot.lane.b32.xlu1 %v448_v52, %s941_s24  ;;  %718 = vrot.lane.b32.xlu0 %v450_v54, %s941_s24 }
 0x1dc   :  { %741 = vrot.lane.b32.xlu1 %v335_v55, %s942_s25  ;;  %743 = vrot.lane.b32.xlu0 %v337_v57, %s942_s25 }
 0x1e0   :  { %745 = vrot.lane.b32.xlu1 %v454_v56, %s942_s25  ;;  %747 = vrot.lane.b32.xlu0 %v456_v58, %s942_s25  ;;  %v535_v58 = vand.u32 255, %v1093_v21 }
 0x1e4   :  { %774 = vrot.lane.b32.xlu0 %v341_v59, %s943_s26  ;;  %776 = vrot.lane.b32.xlu1 %v343_v61, %s943_s26 }
 0x1e8   :  { %778 = vrot.lane.b32.xlu0 %v460_v60, %s943_s26  ;;  %780 = vrot.lane.b32.xlu1 %v462_v62, %s943_s26 }
 0x1ec   :  { %803 = vrot.lane.b32.xlu0 %v347_v63, %s944_s27  ;;  %805 = vrot.lane.b32.xlu1 %v349_v1, %s944_s27 }
 0x1f0   :  { %807 = vrot.lane.b32.xlu0 %v466_v0, %s944_s27  ;;  %809 = vrot.lane.b32.xlu1 %v468_v2, %s944_s27 }
 0x226   :  { %v593_v4 = vpop.permute.xlu1 %592  ;;  %v589_v5 = vpop.permute.xlu0 %588 }
 0x22a   :  { %v595_v6 = vpop.permute.xlu0 %594  ;;  %v591_v7 = vpop.permute.xlu1 %590 }
 0x22b   :  { %v600_v44 = vsel %vm596_vm5, %v595_v6, %v589_v5  ;;  %v599_v52 = vsel %vm596_vm5, %v589_v5, %v591_v7  ;;  %v597_v55 = vsel %vm596_vm5, %v593_v4, %v595_v6  ;;  %v598_v56 = vsel %vm596_vm5, %v591_v7, %v593_v4  ;;  %vm661_vm5 = vmand %vm1151_vm15, %vm1134_vm11 }
 0x22c   :  { %v613_v59 = vsel %vm1383_vm1, %v600_v44, 0.0  ;;  %v614_v63 = vsel %vm1126_vm9, %v599_v52, 0.0  ;;  %v615_v6 = vsel %vm603_vm12, %v598_v56, 0.0  ;;  %vm1385_vm1 = vcmp.lt.s32.totalorder %v1087_v17, 1 }
 0x22d   :  { %v616_v30 = vsel %vm1122_vm8, %v597_v55, 0.0  ;;  %vm1389_vm12 = vcmp.lt.s32.totalorder %v1087_v17, 113 }
 0x22e   :  { %v1077_v8 = vpop.permute.xlu1 %617  ;;  %v620_v9 = vpop.permute.xlu0 %619 }
 0x22f   :  { %v628_v0 = vsel %vm625_vm6, %v1077_v8, %v620_v9 }
 0x230   :  { %v643_v22 = vadd.f32 %v628_v0, %v614_v63 }
 0x232   :  { %v1079_v10 = vpop.permute.xlu1 %621  ;;  %v1081_v11 = vpop.permute.xlu0 %623 }
 0x233   :  { %v629_v40 = vsel %vm625_vm6, %v1081_v11, %v1077_v8  ;;  %v627_v53 = vsel %vm625_vm6, %v620_v9, %v1079_v10 }
 0x234   :  { %v638_v54 = vsel %vm1108_vm4, %v629_v40, 0.0  ;;  %v640_v1 = vsel %vm1134_vm11, %v627_v53, 0.0  ;;  %vm1387_vm11 = vmmov %vm1385_vm1 }
 0x235   :  { %v642_v2 = vadd.f32 %v638_v54, %v613_v59  ;;  %v644_v23 = vadd.f32 %v640_v1, %v615_v6 }
 0x236   :  { %v647_v12 = vpop.permute.xlu1 %646  ;;  %v649_v13 = vpop.permute.xlu0 %648 }
 0x237   :  { %v657_v60 = vsel %vm654_vm14, %v647_v12, %v649_v13 }
 0x238   :  { %v672_v8 = vsel %vm1146_vm13, %v657_v60, 0.0 }
 0x23a   :  { %v1083_v15 = vpop.permute.xlu1 %650  ;;  %v1085_v16 = vpop.permute.xlu0 %652 }
 0x23b   :  { %v658_v45 = vsel %vm654_vm14, %v1085_v16, %v647_v12  ;;  %v656_v61 = vsel %vm654_vm14, %v649_v13, %v1083_v15  ;;  %v655_v14 = vsel %vm654_vm14, %v1083_v15, %v1085_v16  ;;  %vm1255_vm14 = vcmp.lt.s32.totalorder %v535_v58, 240 }
 0x23c   :  { %v673_v9 = vsel %vm661_vm5, %v656_v61, 0.0  ;;  %vm782_vm5 = vcmp.lt.s32.totalorder %v1087_v17, 112 }
 0x23e   :  { %v680_v18 = vpop.permute.xlu1 %679  ;;  %v682_v19 = vpop.permute.xlu0 %681 }
 0x23f   :  { %v690_v7 = vsel %vm1385_vm1, %v680_v18, %v682_v19 }
 0x240   :  { %v701_v24 = vsel %vm1126_vm9, %v690_v7, 0.0 }
 0x242   :  { %v1098_v25 = vpop.permute.xlu1 %683  ;;  %v1100_v26 = vpop.permute.xlu0 %685 }
 0x243   :  { %v691_v57 = vsel %vm1362_vm2, %v1100_v26, %v680_v18  ;;  %vm1384_vm2 = vmand %vm1118_vm7, %vm1108_vm4  ;;  %v626_v18 = vsel %vm625_vm6, %v1079_v10, %v1081_v11  ;;  %v688_v15 = vsel %vm1387_vm11, %v1098_v25, %v1100_v26  ;;  %v676_v10 = vadd.f32 %v672_v8, %v643_v22 }
 0x244   :  { %v671_v62 = vsel %vm1384_vm2, %v658_v45, 0.0  ;;  %vm1386_vm4 = vmmov %vm1385_vm1  ;;  %v700_v13 = vsel %vm1104_vm3, %v691_v57, 0.0  ;;  %v677_v11 = vadd.f32 %v673_v9, %v644_v23  ;;  %v645_v32 = vadd.f32 %v626_v18, %v616_v30 }
 0x245   :  { %v689_v12 = vsel %vm1386_vm4, %v682_v19, %v1098_v25  ;;  %v675_v21 = vadd.f32 %v671_v62, %v642_v2  ;;  %v549_v19 = vand.u32 255, %v1090_v20  ;;  %v674_v20 = vsel %vm1155_vm0, %v655_v14, 0.0 }
 0x246   :  { %v1112_v33 = vpop.permute.xlu1 %712  ;;  %v1114_v34 = vpop.permute.xlu0 %714  ;;  %v702_v27 = vsel %vm1130_vm10, %v689_v12, 0.0  ;;  %vm1388_vm6 = vcmp.lt.s32.totalorder %v1087_v17, 127  ;;  %v705_v40 = vadd.f32 %v701_v24, %v676_v10  ;;  %v703_v25 = vsel %vm1122_vm8, %v688_v15, 0.0 }
 0x247   :  { %v704_v16 = vadd.f32 %v700_v13, %v675_v21  ;;  %v723_v39 = vsel %vm1388_vm6, %v1112_v33, %v1114_v34  ;;  %v706_v44 = vadd.f32 %v702_v27, %v677_v11  ;;  %v678_v26 = vadd.f32 %v674_v20, %v645_v32  ;;  %vm1394_vm1 = vmmov %vm1388_vm6 }
 0x248   :  { %v733_v56 = vsel %vm1118_vm7, %v723_v39, 0.0  ;;  %vm1261_vm2 = vcmp.lt.s32.totalorder %v549_v19, 240  ;;  %vm1395_vm4 = vmmov %vm1394_vm1  ;;  %v709_v61 = vadd.f32 %v705_v40, %v1071_v49 }
 0x249   :  { %v708_v45 = vadd.f32 %v704_v16, %v1067_v47  ;;  %v707_v59 = vadd.f32 %v703_v25, %v678_v26  ;;  %vm1396_vm11 = vmmov %vm1394_vm1  ;;  %v710_v62 = vadd.f32 %v706_v44, %v1069_v48 }
 0x24a   :  { %v717_v46 = vpop.permute.xlu1 %716  ;;  %v719_v51 = vpop.permute.xlu0 %718  ;;  %vm755_vm6 = vmand %vm1126_vm9, %vm1255_vm14 }
 0x24b   :  { %v722_v47 = vsel %vm1394_vm1, %v1114_v34, %v717_v46  ;;  %v721_v58 = vsel %vm1395_vm4, %v717_v46, %v719_v51  ;;  %v724_v60 = vsel %vm1396_vm11, %v719_v51, %v1112_v33  ;;  %v737_v34 = vadd.f32 %v733_v56, %v708_v45  ;;  %vm757_vm4 = vmand %vm1122_vm8, %vm1261_vm2 }
 0x24c   :  { %vm1397_vm1 = vcmp.lt.s32.totalorder %v1087_v17, 113  ;;  %v734_v51 = vsel %vm1146_vm13, %v722_v47, 0.0  ;;  %v735_v0 = vsel %vm1151_vm15, %v721_v58, 0.0  ;;  %v736_v1 = vsel %vm1155_vm0, %v724_v60, 0.0  ;;  %vm817_vm8 = vmand %vm1146_vm13, %vm1255_vm14 }
 0x24d   :  { %vm1398_vm11 = vmmov %vm1397_vm1  ;;  %v711_v2 = vadd.f32 %v707_v59, %v1073_v50  ;;  %v738_v8 = vadd.f32 %v734_v51, %v709_v61  ;;  %v739_v9 = vadd.f32 %v735_v0, %v710_v62 }
 0x24e   :  { %v742_v4 = vpop.permute.xlu1 %741  ;;  %v744_v5 = vpop.permute.xlu0 %743  ;;  %vm819_vm9 = vmand %vm1155_vm0, %vm1261_vm2 }
 0x24f   :  { %v752_v52 = vsel %vm1389_vm12, %v742_v4, %v744_v5  ;;  %vm811_vm12 = vcmp.lt.s32.totalorder %v1087_v17, 111  ;;  %v740_v50 = vadd.f32 %v736_v1, %v711_v2 }
 0x250   :  { %v766_v63 = vsel %vm1104_vm3, %v752_v52, 0.0  ;;  %vm1399_vm3 = vmmov %vm1397_vm1 }
 0x252   :  { %v746_v28 = vpop.permute.xlu1 %745  ;;  %v748_v29 = vpop.permute.xlu0 %747 }
 0x253   :  { %v751_v46 = vsel %vm1397_vm1, %v744_v5, %v746_v28  ;;  %v750_v48 = vsel %vm1398_vm11, %v746_v28, %v748_v29  ;;  %v753_v49 = vsel %vm1399_vm3, %v748_v29, %v742_v4  ;;  %v770_v5 = vadd.f32 %v766_v63, %v737_v34 }
 0x254   :  { %v767_v7 = vsel %vm755_vm6, %v751_v46, 0.0  ;;  %v768_v12 = vsel %vm1130_vm10, %v750_v48, 0.0  ;;  %v769_v13 = vsel %vm757_vm4, %v753_v49, 0.0 }
 0x255   :  { %v771_v19 = vadd.f32 %v767_v7, %v738_v8  ;;  %v772_v24 = vadd.f32 %v768_v12, %v739_v9  ;;  %v773_v27 = vadd.f32 %v769_v13, %v740_v50 }
 0x256   :  { %v775_v54 = vpop.permute.xlu0 %774  ;;  %v777_v55 = vpop.permute.xlu1 %776 }
 0x257   :  { %v785_v36 = vsel %vm782_vm5, %v775_v54, %v777_v55 }
 0x258   :  { %v799_v14 = vadd.f32 %v785_v36, %v770_v5 }
 0x25a   :  { %v779_v31 = vpop.permute.xlu0 %778  ;;  %v781_v33 = vpop.permute.xlu1 %780 }
 0x25b   :  { %v784_v4 = vsel %vm782_vm5, %v777_v55, %v779_v31  ;;  %v786_v6 = vsel %vm782_vm5, %v781_v33, %v775_v54  ;;  %v783_v37 = vsel %vm782_vm5, %v779_v31, %v781_v33 }
 0x25c   :  { %v796_v23 = vsel %vm1255_vm14, %v784_v4, 0.0  ;;  %v798_v18 = vsel %vm1261_vm2, %v786_v6, 0.0  ;;  %v801_v29 = vadd.f32 %v783_v37, %v772_v24 }
 0x25d   :  { %v800_v28 = vadd.f32 %v796_v23, %v771_v19  ;;  %v802_v30 = vadd.f32 %v798_v18, %v773_v27 }
 0x25e   :  { %v804_v21 = vpop.permute.xlu0 %803  ;;  %v806_v22 = vpop.permute.xlu1 %805 }
 0x25f   :  { %v814_v38 = vsel %vm811_vm12, %v804_v21, %v806_v22 }
 0x260   :  { %v828_v15 = vsel %vm1118_vm7, %v814_v38, 0.0 }
 0x261   :  { %v832_v16 = vadd.f32 %v828_v15, %v799_v14 }
 0x262   :  { %v808_v10 = vpop.permute.xlu0 %807  ;;  %v810_v11 = vpop.permute.xlu1 %809 }
 0x263   :  { %v842_v20 = vadd.f32 %v1075_v3, %v832_v16  ;;  %v813_v35 = vsel %vm811_vm12, %v806_v22, %v808_v10  ;;  %v812_v41 = vsel %vm811_vm12, %v808_v10, %v810_v11  ;;  %v815_v32 = vsel %vm811_vm12, %v810_v11, %v804_v21 }
 0x264   :  { %v829_v39 = vsel %vm817_vm8, %v813_v35, 0.0  ;;  %v830_v43 = vsel %vm1151_vm15, %v812_v41, 0.0  ;;  %v831_v40 = vsel %vm819_vm9, %v815_v32, 0.0 }
 0x265   :  { %v846_v44 = vmax.f32 %v842_v20, 0.0  ;;  %v833_v25 = vadd.f32 %v829_v39, %v800_v28  ;;  %v834_v26 = vadd.f32 %v830_v43, %v801_v29  ;;  %v835_v45 = vadd.f32 %v831_v40, %v802_v30 }
 0x267   :  { %850 = vst [vmem:[#allocation2] sm:$0xff] %v846_v44  ;;  %v843_v52 = vadd.f32 %v1075_v3, %v833_v25  ;;  %v844_v53 = vadd.f32 %v1075_v3, %v834_v26  ;;  %v845_v54 = vadd.f32 %v1075_v3, %v835_v45 }
 0x269   :  { %v847_v17 = vmax.f32 %v843_v52, 0.0  ;;  %v848_v55 = vmax.f32 %v844_v53, 0.0  ;;  %v849_v56 = vmax.f32 %v845_v54, 0.0 }
 0x26b   :  { %851 = vst [vmem:[#allocation2 + $0x8] sm:$0xff] %v847_v17  ;;  %853 = vst [vmem:[#allocation2 + $0x10] sm:$0xff] %v848_v55 }
 0x26c   :  { %854 = vst [vmem:[#allocation2 + $0x18] sm:$0xff] %v849_v56 }
 0x26d   :  { %922 = shalt.err (!%p919_p4)
}
 0x26e   :  { %s923_s30 = scalar_lea.hbm %s1361_s5, 512 }
 0x26f   :  { %p924_p5 = scmp.ne.s32.totalorder %s1361_s5, %s923_s30  ;;  %p927_p6 = scmp.lt.u32.totalorder %s923_s30, %s1361_s5 }
 0x271   :  { %p929_p7 = pnand %p927_p6, %p924_p5 }
 0x273   :  { %932 = shalt.err (!%p929_p7)
}
 0x274   :  { %s946_s9 = smov 256  }
 0x275   :  { %866 = dma.vmem_to_hbm [thread:$0]  %s861_s29, 512, %s1361_s5, [#allocation3], %s946_s9, %s946_s9, %s938_s3  }
 0x276   :  { %933 = dma.done.wait [#allocation3], 512  }
 0x277   :  { %934 = vsyncadd [#allocation3], 4294966784 }
 0x278   :  { %870 = vsyncpa [#allocation3], 1 }

</bundles_post_ra>
